<compile_context>
chip_gen: v6e
topology: v6e:2x2x1
jax: 0.10.0
libtpu: 0.0.40
codegen_flags: <defaults>
</compile_context>

<pallas_src>
import math

import jax
import jax.numpy as jnp
from jax.experimental import pallas as pl
from jax.experimental.pallas import tpu as pltpu

_LANE = 128
_SUBLANE = 8
_MAX_TM = 512


def _round_up(x, m):
    return (x + m - 1) // m * m


def _logreg_kernel(x_ref, w_ref, b_ref, o_ref):
    # (tm, F) @ (F, Cp) on the MXU with f32 accumulation, then VPU bias add.
    z = jnp.dot(x_ref[...], w_ref[...], preferred_element_type=jnp.float32)
    o_ref[...] = (z + b_ref[...]).astype(o_ref.dtype)


def prepare_logreg_params(weight, bias, *, compute_dtype=jnp.bfloat16):
    """One-time prep of nn.Linear params for the Pallas kernel.

    weight: (C, F) (PyTorch layout); bias: (C,).
    Returns:
      w_t: (F, Cp) compute_dtype, class axis zero-padded to a multiple of 128.
      b2:  (1, Cp) float32, zero-padded bias (added post-matmul in f32).
    Call once per model, NOT per forward pass.
    """
    C, F = weight.shape
    Cp = _round_up(max(C, _LANE), _LANE)
    w_t = jnp.zeros((F, Cp), compute_dtype).at[:, :C].set(
        weight.T.astype(compute_dtype))
    b2 = jnp.zeros((1, Cp), jnp.float32).at[:, :C].set(bias.astype(jnp.float32))
    return w_t, b2


def _pick_row_tile(N, tm):
    """Row tile: multiple of 8, <= _MAX_TM, minimizing padded rows."""
    if tm is not None:
        tm = _round_up(tm, _SUBLANE)
        return tm, _round_up(N, tm)
    if N <= _MAX_TM:
        tm = _round_up(N, _SUBLANE)
        return tm, tm
    n_tiles = pl.cdiv(N, _MAX_TM)
    tm = _round_up(pl.cdiv(N, n_tiles), _SUBLANE)
    return tm, n_tiles * tm


def logreg_forward(x, w_t, b2, num_classes, *, tm=None,
                   compute_dtype=jnp.bfloat16):
    """x: (N, F); w_t/b2: prepared (F, Cp)/(1, Cp). Returns (N, num_classes) f32."""
    N, F = x.shape
    Fw, Cp = w_t.shape
    assert Fw == F and Cp % _LANE == 0 and num_classes <= Cp

    tm, Np = _pick_row_tile(N, tm)

    xc = x.astype(compute_dtype)
    if Np != N:
        xc = jnp.zeros((Np, F), compute_dtype).at[:N, :].set(xc)

    # VMEM budget: double-buffered x/out tiles + (double-buffered but
    # grid-invariant, so effectively resident) weight/bias, with 2x headroom.
    bytes_x = tm * F * xc.dtype.itemsize
    bytes_o = tm * Cp * 4
    bytes_w = F * Cp * w_t.dtype.itemsize
    bytes_b = Cp * 4
    vmem_needed = 2 * (bytes_x + bytes_o) + 2 * (bytes_w + bytes_b)
    vmem_limit = int(min(max(2 * vmem_needed, 4 << 20), 32 << 20))

    cost = pl.CostEstimate(
        flops=2 * Np * F * Cp,
        transcendentals=0,
        bytes_accessed=(Np * F * xc.dtype.itemsize + bytes_w + bytes_b
                        + Np * Cp * 4),
    )

    grid = (Np // tm,)
    out = pl.pallas_call(
        _logreg_kernel,
        out_shape=jax.ShapeDtypeStruct((Np, Cp), jnp.float32),
        grid_spec=pltpu.PrefetchScalarGridSpec(
            num_scalar_prefetch=0,
            grid=grid,
            in_specs=[
                pl.BlockSpec((tm, F), lambda i: (i, 0)),    # streamed row tile
                pl.BlockSpec((F, Cp), lambda i: (0, 0)),    # grid-invariant weight
                pl.BlockSpec((1, Cp), lambda i: (0, 0)),    # grid-invariant bias
            ],
            out_specs=pl.BlockSpec((tm, Cp), lambda i: (i, 0)),
        ),
        compiler_params=pltpu.CompilerParams(
            dimension_semantics=("parallel",),
            vmem_limit_bytes=vmem_limit,
        ),
        cost_estimate=cost,
    )(xc, w_t, b2)

    return out[:N, :num_classes]


def init_logreg_params(key, num_features, num_classes):
    """Deterministic init matching nn.Linear + xavier_uniform_ on the weight."""
    k_w, k_b = jax.random.split(key)
    # xavier_uniform_: U(-a, a), a = sqrt(6 / (fan_in + fan_out))
    a = math.sqrt(6.0 / (num_features + num_classes))
    weight = jax.random.uniform(
        k_w, (num_classes, num_features), jnp.float32, minval=-a, maxval=a)
    # PyTorch Linear default bias init: U(-1/sqrt(fan_in), 1/sqrt(fan_in))
    bound = 1.0 / math.sqrt(num_features)
    bias = jax.random.uniform(
        k_b, (num_classes,), jnp.float32, minval=-bound, maxval=bound)
    return weight, bias


if __name__ == "__main__":
    num_features = 32
    num_classes = 16
    batch = 8

    key = jax.random.PRNGKey(0)
    k_x, k_p = jax.random.split(key)
    x = jax.random.normal(k_x, (batch, num_features), jnp.float32)
    weight, bias = init_logreg_params(k_p, num_features, num_classes)

    # One-time param prep (transpose + lane pad + bf16 cast), then forward.
    w_t, b2 = prepare_logreg_params(weight, bias)
    z = logreg_forward(x, w_t, b2, num_classes)
    jax.block_until_ready(z)
    assert z.shape == (batch, num_classes)

    # Tight check vs a same-precision (bf16 inputs, f32 accumulation) reference.
    z_ref_bf16 = jnp.dot(
        x.astype(jnp.bfloat16), weight.T.astype(jnp.bfloat16),
        preferred_element_type=jnp.float32) + bias
    assert jnp.allclose(z, z_ref_bf16, atol=1e-3, rtol=1e-3)

    # Loose semantic check vs the full-f32 nn.Linear reference.
    z_ref_f32 = x @ weight.T + bias
    assert jnp.allclose(z, z_ref_f32, atol=5e-2, rtol=5e-2)

    print("KERNEL_OK")
</pallas_src>

<mosaic_0001>
module attributes {stable_mosaic.version = 11 : i64} {
  func.func @_logreg_kernel(%arg0: i32, %arg1: memref<8x32xbf16, #tpu.memory_space<vmem>>, %arg2: memref<32x128xbf16, #tpu.memory_space<vmem>>, %arg3: memref<1x128xf32, #tpu.memory_space<vmem>>, %arg4: memref<8x128xf32, #tpu.memory_space<vmem>>) attributes {dimension_semantics = [#tpu.dimension_semantics<parallel>], iteration_bounds = array<i64: 1>, scalar_prefetch = 0 : i64, scratch_operands = 0 : i64, tpu.core_type = #tpu.core_type<tc>, window_params = [{transform_indices = @transform_0, window_bounds = array<i64: 8, 32>}, {pipeline_mode = #tpu.pipeline_mode<synchronous>, transform_indices = @transform_1, window_bounds = array<i64: 32, 128>}, {pipeline_mode = #tpu.pipeline_mode<synchronous>, transform_indices = @transform_2, window_bounds = array<i64: 1, 128>}, {transform_indices = @transform_3, window_bounds = array<i64: 8, 128>}]} {
    %c0 = arith.constant 0 : index
    %c0_0 = arith.constant 0 : index
    %0 = vector.load %arg1[%c0, %c0_0] : memref<8x32xbf16, #tpu.memory_space<vmem>>, vector<8x32xbf16>
    %c0_1 = arith.constant 0 : index
    %c0_2 = arith.constant 0 : index
    %1 = vector.load %arg2[%c0_1, %c0_2] : memref<32x128xbf16, #tpu.memory_space<vmem>>, vector<32x128xbf16>
    %cst = arith.constant dense<0.000000e+00> : vector<8x128xf32>
    %2 = tpu.matmul %0, %1, %cst {dimension_numbers = #tpu.dot_dimension_numbers<[1], [0], [0], [1], [0, 0, 1, 1], [], []>} : vector<8x32xbf16>, vector<32x128xbf16>, vector<8x128xf32> -> vector<8x128xf32>
    %c0_3 = arith.constant 0 : index
    %c0_4 = arith.constant 0 : index
    %3 = vector.load %arg3[%c0_3, %c0_4] : memref<1x128xf32, #tpu.memory_space<vmem>>, vector<1x128xf32>
    %4 = vector.broadcast %3 : vector<1x128xf32> to vector<8x128xf32>
    %5 = arith.addf %2, %4 : vector<8x128xf32>
    %c0_5 = arith.constant 0 : index
    %c0_6 = arith.constant 0 : index
    %6 = vector.load %arg4[%c0_5, %c0_6] : memref<8x128xf32, #tpu.memory_space<vmem>>, vector<8x128xf32>
    tpu.vector_store %arg4[%c0_5, %c0_6], %5 {strides = array<i32>} : memref<8x128xf32, #tpu.memory_space<vmem>>, vector<8x128xf32>,
    return
  }
  func.func @transform_0(%arg0: i32) -> (i32, i32) {
    %c0_i32 = arith.constant 0 : i32
    %c0_i32_0 = arith.constant 0 : i32
    return %arg0, %c0_i32 : i32, i32
  }
  func.func @transform_1(%arg0: i32) -> (i32, i32) {
    %c0_i32 = arith.constant 0 : i32
    %c0_i32_0 = arith.constant 0 : i32
    %c0_i32_1 = arith.constant 0 : i32
    return %c0_i32, %c0_i32_0 : i32, i32
  }
  func.func @transform_2(%arg0: i32) -> (i32, i32) {
    %c0_i32 = arith.constant 0 : i32
    %c0_i32_0 = arith.constant 0 : i32
    %c0_i32_1 = arith.constant 0 : i32
    return %c0_i32, %c0_i32_0 : i32, i32
  }
  func.func @transform_3(%arg0: i32) -> (i32, i32) {
    %c0_i32 = arith.constant 0 : i32
    %c0_i32_0 = arith.constant 0 : i32
    return %arg0, %c0_i32 : i32, i32
  }
}

</mosaic_0001>

<bundles_post_ra>
// kernel: tpu_custom_call.1
= control target key start
LH: loop header
LB: loop body
LE: loop exit
PB: predicated region body
PF: predicated region fallthrough
CT: control target
= control target key end

     0   :  { %8 = vsyncpa [#allocation3], 0  ;;  %s256_s0 = inlined_call_operand.hbm [shape: bf16[8,32], index: 0, kind: input, shape index: {}]   ;;  %s257_s1 = inlined_call_operand.hbm [shape: bf16[32,128], index: 1, kind: input, shape index: {}]   ;;  %s258_s2 = inlined_call_operand.vmem [shape: f32[1,128], index: 2, kind: input, shape index: {}]   ;;  %s259_s3 = inlined_call_operand.hbm [shape: f32[8,128], index: 3, kind: output, shape index: {}]  }
   0x1   :  { %9 = vsyncpa [#allocation6], 0 }
   0x2   :  { %10 = vsyncpa [#allocation4], 0  ;;  %s217_s12 = smov [#allocation2]   ;;  %s218_s14 = smov [#allocation5]  }
   0x3   :  { %s17_s13 = sshll.u32 %s217_s12, 4  ;;  %s26_s15 = sshll.u32 %s218_s14, 4  ;;  %s18_s13 = int_to_ptr.vmem [resolvable:$true] %s17_s13  ;;  %s27_s15 = int_to_ptr.vmem [resolvable:$true] %s26_s15 }
   0x4   :  { %s159_s16 = scalar_lea.vmem %s18_s13, 64  ;;  %p164_p1 = scmp.lt.s32.totalorder %s18_s13, %s18_s13 }
   0x5   :  { %p160_p0 = scmp.ne.s32.totalorder %s18_s13, %s159_s16  ;;  %p165_p2 = scmp.lt.s32.totalorder %s159_s16, %s159_s16 }
   0x7   :  { %p166_p3 = por %p165_p2, %p164_p1 }
   0x9   :  { %p167_p4 = pnand %p166_p3, %p160_p0 }
   0xb   :  { %170 = shalt.err (!%p167_p4)
}
   0xc   :  { %20 = dma.hbm_to_vmem [thread:$0]  %s256_s0, 64, %s18_s13, [#allocation3]  }
   0xd   :  { %s179_s19 = scalar_lea.vmem %s27_s15, 256  ;;  %p184_p6 = scmp.lt.s32.totalorder %s27_s15, %s27_s15 }
   0xe   :  { %p180_p5 = scmp.ne.s32.totalorder %s27_s15, %s179_s19  ;;  %p185_p7 = scmp.lt.s32.totalorder %s179_s19, %s179_s19 }
  0x10   :  { %p186_p8 = por %p185_p7, %p184_p6 }
  0x12   :  { %p187_p9 = pnand %p186_p8, %p180_p5 }
  0x14   :  { %190 = shalt.err (!%p187_p9)
}
  0x15   :  { %s219_s20 = smov 64   ;;  %s220_s21 = smov 4  }
  0x16   :  { %32 = dma.hbm_to_vmem [thread:$0]  %s257_s1, 256, %s27_s15, [#allocation6], %s219_s20, %s219_s20, %s220_s21  }
  0x17   :  { %211 = dma.done.wait [#allocation3], 64  }
  0x18   :  { %212 = vsyncadd [#allocation3], 4294967232 }
  0x19   :  { %213 = dma.done.wait [#allocation6], 256  }
  0x1a   :  { %214 = vsyncadd [#allocation6], 4294967040  ;;  %v221_v0 = vmov 0.0   ;;  %vm222_vm0 = vmmov 0   ;;  %v149_v1 = vld [vmem:[#allocation5 + $0x8] sm:$0xff]   ;;  %v150_v2 = vld [vmem:[#allocation5] sm:$0xff]  }
  0x1b   :  { %134 = vmatprep.subr.bf16.mxu0 %v221_v0  ;;  %138 = vmatprep.mubr.msk.bf16.mxu0 %vm222_vm0, %v221_v0  ;;  %v42_v3 = vld [vmem:[#allocation2] sm:$0xf]  ;;  %vm66_vm1 = vcmask 261120   ;;  %s223_s1 = smov [#allocation7]  }
  0x1c   :  { %135 = vmatpush3.bf16.msra.mxu0 %v149_v1  ;;  %v127_v4 = vld [vmem:[%s258_s2] ss:$0 sm:$0xff]  ;;  %s117_s25 = sshll.u32 %s223_s1, 4  ;;  %s118_s25 = int_to_ptr.vmem [resolvable:$true] %s117_s25 }
  0x1d   :  { %136 = vmatprep.subr.bf16.mxu0 %v221_v0  ;;  %s191_s26 = scalar_lea.vmem %s118_s25, 128  ;;  %p196_p11 = scmp.lt.s32.totalorder %s118_s25, %s118_s25 }
  0x1e   :  { %p192_p10 = scmp.ne.s32.totalorder %s118_s25, %s191_s26  ;;  %p197_p12 = scmp.lt.s32.totalorder %s191_s26, %s191_s26 }
  0x20   :  { %137 = vmatpush3.bf16.msra.mxu0 %v150_v2  ;;  %p198_p13 = por %p197_p12, %p196_p11 }
  0x22   :  { %p199_p0 = pnand %p198_p13, %p192_p10 }
  0x23   :  { %139 = vmatmul.mubr.msk.bf16.vlgmr.msra.gmra.mxu0 %vm66_vm1, %v42_v3 }
  0xe3   :  { %v104_v5 = vpop.f32.mrf.mxu0 }
  0xe4   :  { %v105_v6 = vadd.f32 %v127_v4, %v104_v5 }
  0xe5   :  { %v140_v7 = vpop.f32.mrf.mxu0 }
  0xe6   :  { %110 = vst [vmem:[#allocation7] sm:$0xff] %v105_v6 }
  0xe7   :  { %v107_v8 = vpop.f32.mrf.mxu0 }
  0xe8   :  { %202 = shalt.err (!%p199_p0)
}
  0xe9   :  { %120 = dma.vmem_to_hbm [thread:$0]  %s118_s25, 128, %s259_s3, [#allocation4]   ;;  %v141_v9 = vpop.f32.mrf.mxu0 }
  0xea   :  { %215 = dma.done.wait [#allocation4], 128  }
  0xeb   :  { %216 = vsyncadd [#allocation4], 4294967168 }
  0xec   :  { %124 = vsyncpa [#allocation3], 1 }
  0xed   :  { %125 = vsyncpa [#allocation6], 1 }
  0xee   :  { %126 = vsyncpa [#allocation4], 1 }

</bundles_post_ra>
